<compile_context>
chip_gen: v6e
topology: v6e:2x2x1
jax: 0.10.0
libtpu: 0.0.40
codegen_flags: <defaults>
</compile_context>

<pallas_src>
import functools

import jax
import jax.numpy as jnp
import numpy as np
from jax.experimental import pallas as pl
from jax.experimental.pallas import tpu as pltpu


def _round_up(x, m):
    return (x + m - 1) // m * m


def _shift_rows_up(v, j):
    """Return w with w[m] = v[(m + j) mod M].

    Wrapped rows (across batch-sample boundaries inside the flattened tile, and around
    the whole tile) only ever land on time positions discarded by the additive mask --
    see the invariant assertion in textcnn_forward.
    """
    if j == 0:
        return v
    return jnp.concatenate([v[j:], v[:j]], axis=0)


# ---------------------------------------------------------------------------
# Fused kernel: all conv branches + max-pool-over-time + bias + ReLU + Linear.
# ---------------------------------------------------------------------------
def _textcnn_fused_kernel(emb_ref, wc_ref, bc_ref, mask_ref, wo_ref, bo_ref,
                          out_ref, *, k_max):
    tb, t_len, e = emb_ref.shape            # (tile_b, L_pad, E)  -- E unpadded
    c_tot = wc_ref.shape[2]                 # round_up(n_branches * kernel_num, 128)
    m = tb * t_len

    # One big-M MXU operand: flatten (batch, time) -> rows.
    x = emb_ref[...].reshape(m, e)          # bf16 (or f32) MXU operand
    xf = x.astype(jnp.float32)              # sublane shifts done on f32 (cheap, E lanes)

    # acc[b*T + t, c] = sum_j emb[b, t+j, :] @ W[j, :, c]   (f32 accumulation).
    acc = jnp.dot(x, wc_ref[0], preferred_element_type=jnp.float32)
    for j in range(1, k_max):
        xj = _shift_rows_up(xf, j).astype(x.dtype)
        acc = acc + jnp.dot(xj, wc_ref[j], preferred_element_type=jnp.float32)

    # Additive 0 / -1e30 validity mask: per-branch time limit (t <= L - k_i); it also
    # hides every row contaminated by the wrap of the flattened shift.
    acc = acc.reshape(tb, t_len, c_tot) + mask_ref[...][None]

    pooled = jnp.max(acc, axis=1)                           # max_pool1d over time
    pooled = jnp.maximum(pooled + bc_ref[...], 0.0)         # bias + ReLU (post-pool)

    out_ref[...] = (
        jnp.dot(pooled, wo_ref[...], preferred_element_type=jnp.float32)
        + bo_ref[...]
    )


# ---------------------------------------------------------------------------
# Parameter handling.
# ---------------------------------------------------------------------------
def init_params(key, *, n_labels, vocab_size, embed_dim, kernel_sizes, kernel_num):
    """Parameters in PyTorch layouts (Embedding / Conv2d / Linear)."""
    n_br = len(kernel_sizes)
    keys = jax.random.split(key, 2 * n_br + 3)
    ki = iter(keys)
    params = {
        "kernel_sizes": tuple(kernel_sizes),
        "embedding": jax.random.normal(next(ki), (vocab_size, embed_dim),
                                       jnp.float32) * 0.1,
        "conv_w": [],
        "conv_b": [],
    }
    for k in kernel_sizes:
        # PyTorch Conv2d weight: (out_channels, in_channels=1, k, embed_dim)
        params["conv_w"].append(
            jax.random.normal(next(ki), (kernel_num, 1, k, embed_dim),
                              jnp.float32) * 0.1)
        params["conv_b"].append(
            jax.random.normal(next(ki), (kernel_num,), jnp.float32) * 0.1)
    feat = n_br * kernel_num
    # PyTorch Linear: weight (n_labels, feat), bias (n_labels,)
    params["out_w"] = jax.random.normal(next(ki), (n_labels, feat), jnp.float32) * 0.1
    params["out_b"] = jax.random.normal(next(ki), (n_labels,), jnp.float32) * 0.1
    return params


def pack_params(params, *, dtype=jnp.bfloat16):
    """Pack PyTorch-layout params into kernel operands.

    All branches share one 128-lane channel block; the embedding table stays at the
    unpadded embed dim; MXU operands (table + conv weights) use `dtype` (bf16 default),
    everything accumulated / reduced in f32.
    """
    ks = params["kernel_sizes"]
    n_br = len(ks)
    k_max = max(ks)
    vocab, embed_dim = params["embedding"].shape
    kernel_num = params["conv_w"][0].shape[0]
    n_labels = params["out_w"].shape[0]

    c_used = n_br * kernel_num
    c_tot = _round_up(c_used, 128)
    n_pad = _round_up(n_labels, 128)

    embedding = params["embedding"].astype(dtype)             # (vocab, E), unpadded

    w_conv = np.zeros((k_max, embed_dim, c_tot), np.float32)  # stacked over time offset
    b_conv = np.zeros((1, c_tot), np.float32)
    for i, k in enumerate(ks):
        wi = np.asarray(params["conv_w"][i], np.float32)[:, 0]          # (C, k, E)
        w_conv[:k, :, i * kernel_num:(i + 1) * kernel_num] = np.transpose(wi, (1, 2, 0))
        b_conv[0, i * kernel_num:(i + 1) * kernel_num] = np.asarray(
            params["conv_b"][i], np.float32)

    w_out = np.zeros((c_tot, n_pad), np.float32)
    w_out[:c_used, :n_labels] = np.asarray(params["out_w"], np.float32).T
    b_out = np.zeros((1, n_pad), np.float32)
    b_out[0, :n_labels] = np.asarray(params["out_b"], np.float32)

    return {
        "kernel_sizes": ks,
        "kernel_num": kernel_num,
        "n_labels": n_labels,
        "embed_dim": embed_dim,
        "c_tot": c_tot,
        "n_pad": n_pad,
        "embedding": embedding,
        "w_conv": jnp.asarray(w_conv, dtype),
        "b_conv": jnp.asarray(b_conv),
        "w_out": jnp.asarray(w_out),
        "b_out": jnp.asarray(b_out),
    }


# ---------------------------------------------------------------------------
# VMEM budgeting / batch-tile selection (per generation).
# ---------------------------------------------------------------------------
def _vmem_budget_bytes():
    cap = 64 * 2 ** 20
    try:
        info = pltpu.get_tpu_info()
        cap = int(getattr(info, "vmem_capacity_bytes", cap))
    except Exception:
        pass
    # Leave headroom for compiler scratch / double buffers:
    #   v7x (64 MiB/TC) -> 48 MiB scoped budget; v5e/v6e (128 MiB) -> capped at ~96 MiB.
    return min(cap * 3 // 4, 100 * 2 ** 20)


def _vmem_usage(tile_b, l_pad, e, c_tot, n_pad, k_max, itemsize):
    resident = (k_max * e * c_tot * itemsize          # conv weights
                + l_pad * c_tot * 4                   # additive mask
                + c_tot * n_pad * 4                   # linear weights
                + (c_tot + n_pad) * 4)                # biases
    m = tile_b * l_pad
    per_step = (2 * m * e * itemsize                  # double-buffered emb block
                + 2 * tile_b * n_pad * 4              # double-buffered output block
                + m * (k_max * e * 4 + 2 * c_tot * 4))  # f32 shift copies + acc + masked
    return resident, per_step


def _pick_tile_b(B, l_pad, e, c_tot, n_pad, k_max, itemsize, budget):
    tb = 8
    b_cap = max(8, _round_up(B, 8))
    while tb * 2 <= b_cap:
        resident, per_step = _vmem_usage(tb * 2, l_pad, e, c_tot, n_pad, k_max, itemsize)
        if 2 * resident + per_step + 8 * 2 ** 20 > budget:
            break
        tb *= 2
    # Keep >= 2 grid steps when the batch allows it (megacore sharding / pipelining).
    while tb > 8 and _round_up(B, tb) // tb < 2:
        tb //= 2
    return tb


# ---------------------------------------------------------------------------
# Forward.
# ---------------------------------------------------------------------------
def textcnn_forward(token_ids, packed, *, tile_b=None):
    """token_ids: (B, L) int32 -> logits (B, n_labels) float32."""
    B, L = token_ids.shape
    ks = packed["kernel_sizes"]
    k_max = max(ks)
    assert L >= k_max, "sequence shorter than the largest conv kernel"

    e = packed["embed_dim"]
    kernel_num = packed["kernel_num"]
    c_tot = packed["c_tot"]
    n_pad = packed["n_pad"]
    n_labels = packed["n_labels"]
    itemsize = jnp.dtype(packed["embedding"].dtype).itemsize

    l_pad = _round_up(L, 16)   # multiple of 16 -> free (tb, L, E)->(tb*L, E) merge for bf16
    # Roll-wrap invariant: a j-shift (j <= k_i - 1) only contaminates flattened rows with
    # t >= l_pad - j >= l_pad - (k_i - 1); branch i keeps only t <= L - k_i, and
    # L - k_i < l_pad - (k_i - 1)  <=>  L <= l_pad, which always holds.
    assert L <= l_pad

    budget = _vmem_budget_bytes()
    if tile_b is None:
        tile_b = _pick_tile_b(B, l_pad, e, c_tot, n_pad, k_max, itemsize, budget)
    b_pad = _round_up(max(B, tile_b), tile_b)

    ids = jnp.pad(token_ids, ((0, b_pad - B), (0, l_pad - L)))
    # Embedding lookup (gather) stays in XLA for now; the table and the emb stream are
    # kept unpadded (E lanes) and bf16 by default, which dominates the HBM traffic.
    emb = jnp.take(packed["embedding"], ids, axis=0)            # (b_pad, l_pad, E)

    # Additive validity mask: 0 where branch i is valid (t <= L - k_i), -1e30 elsewhere
    # (padded channel columns are all -1e30; their linear-weight rows are zero).
    t_idx = np.arange(l_pad, dtype=np.int64)[:, None]
    limit = np.full((c_tot,), -1, np.int64)
    for i, k in enumerate(ks):
        limit[i * kernel_num:(i + 1) * kernel_num] = L - k
    mask = jnp.asarray(np.where(t_idx <= limit[None, :], 0.0, -1e30), jnp.float32)

    grid = (b_pad // tile_b,)
    flops = 2 * b_pad * l_pad * (k_max * e) * c_tot + 2 * b_pad * c_tot * n_pad
    bytes_accessed = (b_pad * l_pad * e * itemsize
                      + k_max * e * c_tot * itemsize
                      + (l_pad * c_tot + c_tot * n_pad + c_tot + n_pad) * 4
                      + b_pad * n_pad * 4)

    resident, per_step = _vmem_usage(tile_b, l_pad, e, c_tot, n_pad, k_max, itemsize)
    vmem_limit = int(min(budget, max(32 * 2 ** 20,
                                     2 * resident + per_step + 8 * 2 ** 20)))

    kernel = functools.partial(_textcnn_fused_kernel, k_max=k_max)

    out = pl.pallas_call(
        kernel,
        out_shape=jax.ShapeDtypeStruct((b_pad, n_pad), jnp.float32),
        grid_spec=pltpu.PrefetchScalarGridSpec(
            num_scalar_prefetch=0,
            grid=grid,
            in_specs=[
                pl.BlockSpec((tile_b, l_pad, e), lambda i: (i, 0, 0)),      # emb tile
                pl.BlockSpec((k_max, e, c_tot), lambda i: (0, 0, 0)),       # conv W
                pl.BlockSpec((1, c_tot), lambda i: (0, 0)),                 # conv bias
                pl.BlockSpec((l_pad, c_tot), lambda i: (0, 0)),             # additive mask
                pl.BlockSpec((c_tot, n_pad), lambda i: (0, 0)),             # linear W
                pl.BlockSpec((1, n_pad), lambda i: (0, 0)),                 # linear bias
            ],
            out_specs=pl.BlockSpec((tile_b, n_pad), lambda i: (i, 0)),
        ),
        compiler_params=pltpu.CompilerParams(
            dimension_semantics=("parallel",),
            vmem_limit_bytes=vmem_limit,
        ),
        cost_estimate=pl.CostEstimate(
            flops=int(flops), transcendentals=0, bytes_accessed=int(bytes_accessed)),
    )(emb, packed["w_conv"], packed["b_conv"], mask,
      packed["w_out"], packed["b_out"])

    return out[:B, :n_labels]


# ---------------------------------------------------------------------------
# Pure numpy float64 reference with exact PyTorch semantics.
# ---------------------------------------------------------------------------
def textcnn_reference_np(token_ids, params):
    ids = np.asarray(token_ids)
    emb = np.asarray(params["embedding"], np.float64)[ids]       # (B, L, E)
    B, L, _ = emb.shape
    pooled = []
    for k, w, b in zip(params["kernel_sizes"], params["conv_w"], params["conv_b"]):
        w = np.asarray(w, np.float64)[:, 0]                      # (C, k, E)
        b = np.asarray(b, np.float64)
        lout = L - k + 1
        acc = np.zeros((B, lout, w.shape[0]))
        for j in range(k):
            acc += np.einsum("ble,ce->blc", emb[:, j:j + lout, :], w[:, j, :])
        acc = np.maximum(acc + b[None, None, :], 0.0)            # ReLU
        pooled.append(acc.max(axis=1))                           # max_pool1d over time
    feats = np.concatenate(pooled, axis=1)
    return feats @ np.asarray(params["out_w"], np.float64).T + np.asarray(
        params["out_b"], np.float64)


if __name__ == "__main__":
    n_labels = 4
    vocab_size = 50
    embed_dim = 32
    kernel_sizes = (2, 3, 4)
    kernel_num = 8
    batch = 2
    seq_len = 16

    key = jax.random.PRNGKey(0)
    pkey, xkey = jax.random.split(key)
    params = init_params(pkey, n_labels=n_labels, vocab_size=vocab_size,
                         embed_dim=embed_dim, kernel_sizes=kernel_sizes,
                         kernel_num=kernel_num)
    token_ids = jax.random.randint(xkey, (batch, seq_len), 0, vocab_size, jnp.int32)

    ref = textcnn_reference_np(token_ids, params)

    # Default path: bf16 MXU operands (embedding table + conv weights) on all
    # generations; f32 accumulation and f32 elementwise tail.
    packed = pack_params(params)                                  # dtype=bf16
    fwd = jax.jit(lambda ids: textcnn_forward(ids, packed))
    logits = fwd(token_ids)
    jax.block_until_ready(logits)
    assert logits.shape == (batch, n_labels), logits.shape
    err16 = np.max(np.abs(np.asarray(logits, np.float64) - ref))
    assert np.allclose(np.asarray(logits, np.float64), ref,
                       atol=3e-2, rtol=3e-2), err16

    # f32 operands: tight numerical check against the PyTorch-semantics reference.
    packed_f32 = pack_params(params, dtype=jnp.float32)
    fwd_f32 = jax.jit(lambda ids: textcnn_forward(ids, packed_f32))
    logits_f32 = fwd_f32(token_ids)
    jax.block_until_ready(logits_f32)
    err32 = np.max(np.abs(np.asarray(logits_f32, np.float64) - ref))
    assert np.allclose(np.asarray(logits_f32, np.float64), ref,
                       atol=1e-3, rtol=1e-3), err32

    print("KERNEL_OK")
</pallas_src>

<mosaic_0001>
module attributes {stable_mosaic.version = 11 : i64} {
  func.func @_textcnn_fused_kernel(%arg0: i32, %arg1: memref<8x16x32xbf16, #tpu.memory_space<vmem>>, %arg2: memref<4x32x128xbf16, #tpu.memory_space<vmem>>, %arg3: memref<1x128xf32, #tpu.memory_space<vmem>>, %arg4: memref<16x128xf32, #tpu.memory_space<vmem>>, %arg5: memref<128x128xf32, #tpu.memory_space<vmem>>, %arg6: memref<1x128xf32, #tpu.memory_space<vmem>>, %arg7: memref<8x128xf32, #tpu.memory_space<vmem>>) attributes {dimension_semantics = [#tpu.dimension_semantics<parallel>], iteration_bounds = array<i64: 1>, scalar_prefetch = 0 : i64, scratch_operands = 0 : i64, tpu.core_type = #tpu.core_type<tc>, window_params = [{transform_indices = @transform_0, window_bounds = array<i64: 8, 16, 32>}, {pipeline_mode = #tpu.pipeline_mode<synchronous>, transform_indices = @transform_1, window_bounds = array<i64: 4, 32, 128>}, {pipeline_mode = #tpu.pipeline_mode<synchronous>, transform_indices = @transform_2, window_bounds = array<i64: 1, 128>}, {pipeline_mode = #tpu.pipeline_mode<synchronous>, transform_indices = @transform_3, window_bounds = array<i64: 16, 128>}, {pipeline_mode = #tpu.pipeline_mode<synchronous>, transform_indices = @transform_4, window_bounds = array<i64: 128, 128>}, {pipeline_mode = #tpu.pipeline_mode<synchronous>, transform_indices = @transform_5, window_bounds = array<i64: 1, 128>}, {transform_indices = @transform_6, window_bounds = array<i64: 8, 128>}]} {
    %c0 = arith.constant 0 : index
    %c0_0 = arith.constant 0 : index
    %c0_1 = arith.constant 0 : index
    %0 = vector.load %arg1[%c0, %c0_0, %c0_1] : memref<8x16x32xbf16, #tpu.memory_space<vmem>>, vector<8x16x32xbf16>
    %1 = vector.shape_cast %0 : vector<8x16x32xbf16> to vector<128x32xbf16>
    %2 = arith.extf %1 : vector<128x32xbf16> to vector<128x32xf32>
    %c0_2 = arith.constant 0 : index
    %c0_3 = arith.constant 0 : index
    %c0_4 = arith.constant 0 : index
    %3 = vector.load %arg2[%c0_2, %c0_3, %c0_4] : memref<4x32x128xbf16, #tpu.memory_space<vmem>>, vector<1x32x128xbf16>
    %4 = vector.shape_cast %3 : vector<1x32x128xbf16> to vector<32x128xbf16>
    %cst = arith.constant dense<0.000000e+00> : vector<128x128xf32>
    %5 = tpu.matmul %1, %4, %cst {dimension_numbers = #tpu.dot_dimension_numbers<[1], [0], [0], [1], [0, 0, 1, 1], [], []>} : vector<128x32xbf16>, vector<32x128xbf16>, vector<128x128xf32> -> vector<128x128xf32>
    %6 = vector.extract_strided_slice %2 {offsets = [1, 0], sizes = [127, 32], strides = [1, 1]} : vector<128x32xf32> to vector<127x32xf32>
    %7 = vector.extract_strided_slice %2 {offsets = [0, 0], sizes = [1, 32], strides = [1, 1]} : vector<128x32xf32> to vector<1x32xf32>
    %8 = tpu.concatenate %6, %7 in 0 : vector<127x32xf32>, vector<1x32xf32> -> vector<128x32xf32>
    %9 = arith.truncf %8 : vector<128x32xf32> to vector<128x32xbf16>
    %c1 = arith.constant 1 : index
    %c0_5 = arith.constant 0 : index
    %c0_6 = arith.constant 0 : index
    %10 = vector.load %arg2[%c1, %c0_5, %c0_6] : memref<4x32x128xbf16, #tpu.memory_space<vmem>>, vector<1x32x128xbf16>
    %11 = vector.shape_cast %10 : vector<1x32x128xbf16> to vector<32x128xbf16>
    %cst_7 = arith.constant dense<0.000000e+00> : vector<128x128xf32>
    %12 = tpu.matmul %9, %11, %cst_7 {dimension_numbers = #tpu.dot_dimension_numbers<[1], [0], [0], [1], [0, 0, 1, 1], [], []>} : vector<128x32xbf16>, vector<32x128xbf16>, vector<128x128xf32> -> vector<128x128xf32>
    %13 = arith.addf %5, %12 : vector<128x128xf32>
    %14 = vector.extract_strided_slice %2 {offsets = [2, 0], sizes = [126, 32], strides = [1, 1]} : vector<128x32xf32> to vector<126x32xf32>
    %15 = vector.extract_strided_slice %2 {offsets = [0, 0], sizes = [2, 32], strides = [1, 1]} : vector<128x32xf32> to vector<2x32xf32>
    %16 = tpu.concatenate %14, %15 in 0 : vector<126x32xf32>, vector<2x32xf32> -> vector<128x32xf32>
    %17 = arith.truncf %16 : vector<128x32xf32> to vector<128x32xbf16>
    %c2 = arith.constant 2 : index
    %c0_8 = arith.constant 0 : index
    %c0_9 = arith.constant 0 : index
    %18 = vector.load %arg2[%c2, %c0_8, %c0_9] : memref<4x32x128xbf16, #tpu.memory_space<vmem>>, vector<1x32x128xbf16>
    %19 = vector.shape_cast %18 : vector<1x32x128xbf16> to vector<32x128xbf16>
    %cst_10 = arith.constant dense<0.000000e+00> : vector<128x128xf32>
    %20 = tpu.matmul %17, %19, %cst_10 {dimension_numbers = #tpu.dot_dimension_numbers<[1], [0], [0], [1], [0, 0, 1, 1], [], []>} : vector<128x32xbf16>, vector<32x128xbf16>, vector<128x128xf32> -> vector<128x128xf32>
    %21 = arith.addf %13, %20 : vector<128x128xf32>
    %22 = vector.extract_strided_slice %2 {offsets = [3, 0], sizes = [125, 32], strides = [1, 1]} : vector<128x32xf32> to vector<125x32xf32>
    %23 = vector.extract_strided_slice %2 {offsets = [0, 0], sizes = [3, 32], strides = [1, 1]} : vector<128x32xf32> to vector<3x32xf32>
    %24 = tpu.concatenate %22, %23 in 0 : vector<125x32xf32>, vector<3x32xf32> -> vector<128x32xf32>
    %25 = arith.truncf %24 : vector<128x32xf32> to vector<128x32xbf16>
    %c3 = arith.constant 3 : index
    %c0_11 = arith.constant 0 : index
    %c0_12 = arith.constant 0 : index
    %26 = vector.load %arg2[%c3, %c0_11, %c0_12] : memref<4x32x128xbf16, #tpu.memory_space<vmem>>, vector<1x32x128xbf16>
    %27 = vector.shape_cast %26 : vector<1x32x128xbf16> to vector<32x128xbf16>
    %cst_13 = arith.constant dense<0.000000e+00> : vector<128x128xf32>
    %28 = tpu.matmul %25, %27, %cst_13 {dimension_numbers = #tpu.dot_dimension_numbers<[1], [0], [0], [1], [0, 0, 1, 1], [], []>} : vector<128x32xbf16>, vector<32x128xbf16>, vector<128x128xf32> -> vector<128x128xf32>
    %29 = arith.addf %21, %28 : vector<128x128xf32>
    %30 = vector.shape_cast %29 : vector<128x128xf32> to vector<8x16x128xf32>
    %c0_14 = arith.constant 0 : index
    %c0_15 = arith.constant 0 : index
    %31 = vector.load %arg4[%c0_14, %c0_15] : memref<16x128xf32, #tpu.memory_space<vmem>>, vector<16x128xf32>
    %32 = vector.shape_cast %31 : vector<16x128xf32> to vector<1x16x128xf32>
    %33 = vector.broadcast %32 : vector<1x16x128xf32> to vector<8x16x128xf32>
    %34 = arith.addf %30, %33 : vector<8x16x128xf32>
    %cst_16 = arith.constant dense<0xFF800000> : vector<8x128xf32>
    %35 = vector.multi_reduction <maximumf>, %34, %cst_16 [1] : vector<8x16x128xf32> to vector<8x128xf32>
    %c0_17 = arith.constant 0 : index
    %c0_18 = arith.constant 0 : index
    %36 = vector.load %arg3[%c0_17, %c0_18] : memref<1x128xf32, #tpu.memory_space<vmem>>, vector<1x128xf32>
    %37 = vector.broadcast %36 : vector<1x128xf32> to vector<8x128xf32>
    %38 = arith.addf %35, %37 : vector<8x128xf32>
    %cst_19 = arith.constant 0.000000e+00 : f32
    %39 = vector.broadcast %cst_19 : f32 to vector<8x128xf32>
    %40 = arith.maximumf %38, %39 : vector<8x128xf32>
    %c0_20 = arith.constant 0 : index
    %c0_21 = arith.constant 0 : index
    %41 = vector.load %arg5[%c0_20, %c0_21] : memref<128x128xf32, #tpu.memory_space<vmem>>, vector<128x128xf32>
    %cst_22 = arith.constant dense<0.000000e+00> : vector<8x128xf32>
    %42 = tpu.matmul %40, %41, %cst_22 {dimension_numbers = #tpu.dot_dimension_numbers<[1], [0], [0], [1], [0, 0, 1, 1], [], []>} : vector<8x128xf32>, vector<128x128xf32>, vector<8x128xf32> -> vector<8x128xf32>
    %c0_23 = arith.constant 0 : index
    %c0_24 = arith.constant 0 : index
    %43 = vector.load %arg6[%c0_23, %c0_24] : memref<1x128xf32, #tpu.memory_space<vmem>>, vector<1x128xf32>
    %44 = vector.broadcast %43 : vector<1x128xf32> to vector<8x128xf32>
    %45 = arith.addf %42, %44 : vector<8x128xf32>
    %c0_25 = arith.constant 0 : index
    %c0_26 = arith.constant 0 : index
    %46 = vector.load %arg7[%c0_25, %c0_26] : memref<8x128xf32, #tpu.memory_space<vmem>>, vector<8x128xf32>
    tpu.vector_store %arg7[%c0_25, %c0_26], %45 {strides = array<i32>} : memref<8x128xf32, #tpu.memory_space<vmem>>, vector<8x128xf32>,
    return
  }
  func.func @transform_0(%arg0: i32) -> (i32, i32, i32) {
    %c0_i32 = arith.constant 0 : i32
    %c0_i32_0 = arith.constant 0 : i32
    %c0_i32_1 = arith.constant 0 : i32
    return %arg0, %c0_i32, %c0_i32_0 : i32, i32, i32
  }
  func.func @transform_1(%arg0: i32) -> (i32, i32, i32) {
    %c0_i32 = arith.constant 0 : i32
    %c0_i32_0 = arith.constant 0 : i32
    %c0_i32_1 = arith.constant 0 : i32
    %c0_i32_2 = arith.constant 0 : i32
    return %c0_i32, %c0_i32_0, %c0_i32_1 : i32, i32, i32
  }
  func.func @transform_2(%arg0: i32) -> (i32, i32) {
    %c0_i32 = arith.constant 0 : i32
    %c0_i32_0 = arith.constant 0 : i32
    %c0_i32_1 = arith.constant 0 : i32
    return %c0_i32, %c0_i32_0 : i32, i32
  }
  func.func @transform_3(%arg0: i32) -> (i32, i32) {
    %c0_i32 = arith.constant 0 : i32
    %c0_i32_0 = arith.constant 0 : i32
    %c0_i32_1 = arith.constant 0 : i32
    return %c0_i32, %c0_i32_0 : i32, i32
  }
  func.func @transform_4(%arg0: i32) -> (i32, i32) {
    %c0_i32 = arith.constant 0 : i32
    %c0_i32_0 = arith.constant 0 : i32
    %c0_i32_1 = arith.constant 0 : i32
    return %c0_i32, %c0_i32_0 : i32, i32
  }
  func.func @transform_5(%arg0: i32) -> (i32, i32) {
    %c0_i32 = arith.constant 0 : i32
    %c0_i32_0 = arith.constant 0 : i32
    %c0_i32_1 = arith.constant 0 : i32
    return %c0_i32, %c0_i32_0 : i32, i32
  }
  func.func @transform_6(%arg0: i32) -> (i32, i32) {
    %c0_i32 = arith.constant 0 : i32
    %c0_i32_0 = arith.constant 0 : i32
    return %arg0, %c0_i32 : i32, i32
  }
}

</mosaic_0001>

<bundles_post_ra>
// kernel: _lambda_.1
= control target key start
LH: loop header
LB: loop body
LE: loop exit
PB: predicated region body
PF: predicated region fallthrough
CT: control target
= control target key end

     0   :  { %vm151_vm0 = vcmask 261120   ;;  %vm76_vm1 = vcmask 1046528   ;;  %vm658_vm2 = vcmask 1044480   ;;  %vm446_vm3 = vcmask 1045504   ;;  %s1743_s1 = inlined_call_operand.vmem [shape: bf16[4,32,128], index: 1, kind: input, shape index: {}]   ;;  %s1744_s0 = inlined_call_operand.vmem [shape: bf16[8,16,32], index: 0, kind: input, shape index: {}]   ;;  %s1745_s4 = inlined_call_operand.vmem [shape: f32[128,128], index: 4, kind: input, shape index: {}]   ;;  %s1746_s3 = inlined_call_operand.vmem [shape: f32[16,128], index: 3, kind: input, shape index: {}]   ;;  %s1747_s2 = inlined_call_operand.vmem [shape: f32[1,128], index: 2, kind: input, shape index: {}]   ;;  %s1748_s5 = inlined_call_operand.vmem [shape: f32[1,128], index: 5, kind: input, shape index: {}]   ;;  %s1749_s6 = inlined_call_operand.vmem [shape: f32[8,128], index: 6, kind: output, shape index: {}]  }
   0x1   :  { %v1331_v0 = vld [vmem:[%s1743_s1 + $0x18] sm:$0xff]   ;;  %v1332_v1 = vld [vmem:[%s1743_s1 + $0x8] sm:$0xff]   ;;  %v1333_v2 = vld [vmem:[%s1743_s1 + $0x10] sm:$0xff]   ;;  %vm1356_vm4 = vmmov 0   ;;  %vm999_vm5 = vcmask 1041409   ;;  %vm1002_vm6 = vcmask 1042434  }
   0x2   :  { %1214 = vmatprep.subr.bf16.mxu0 %v1331_v0  ;;  %1234 = vmatprep.subr.bf16.mxu1 %v1332_v1  ;;  %v1334_v3 = vld [vmem:[%s1743_s1] sm:$0xff]   ;;  %v26_v5 = vld [vmem:[%s1744_s0 + $0x8] sm:$0xff]   ;;  %v28_v6 = vld [vmem:[%s1744_s0 + $0x10] sm:$0xff]   ;;  %vm1005_vm7 = vcmask 1043459   ;;  %vm1008_vm8 = vcmask 1044484   ;;  %vm1011_vm9 = vcmask 1045509  }
   0x3   :  { %1215 = vmatpush3.bf16.msra.mxu0 %v1331_v0  ;;  %1235 = vmatpush3.bf16.msra.mxu1 %v1332_v1  ;;  %v24_v4 = vld [vmem:[%s1744_s0] sm:$0xff]   ;;  %v1417_v9 = vunpack.c.l.bf16 %v26_v5  ;;  %v1337_v10 = vld [vmem:[%s1743_s1 + $0x28] sm:$0xff]   ;;  %v1422_v11 = vunpack.c.h.bf16 %v26_v5  ;;  %v1424_v12 = vunpack.c.l.bf16 %v28_v6  ;;  %v1338_v13 = vld [vmem:[%s1743_s1 + $0x38] sm:$0xff]   ;;  %v1429_v14 = vunpack.c.h.bf16 %v28_v6 }
   0x4   :  { %1216 = vmatprep.subr.bf16.mxu0 %v1333_v2  ;;  %1236 = vmatprep.subr.bf16.mxu1 %v1334_v3  ;;  %v1413_v7 = vunpack.c.l.bf16 %v24_v4  ;;  %v1415_v8 = vunpack.c.h.bf16 %v24_v4  ;;  %v30_v18 = vld [vmem:[%s1744_s0 + $0x18] sm:$0xff]   ;;  %v32_v21 = vld [vmem:[%s1744_s0 + $0x20] sm:$0xff]   ;;  %v34_v26 = vld [vmem:[%s1744_s0 + $0x28] sm:$0xff]   ;;  %vm1014_vm10 = vcmask 1046534   ;;  %vm1017_vm11 = vcmask 1047559  }
   0x5   :  { %v80_v17 = vrot.slane %v1417_v9, 1  ;;  %1238 = vmatprep.mubr.msk.bf16.mxu1 %vm151_vm0, %v24_v4  ;;  %v82_v19 = vrot.slane %v1422_v11, 1  ;;  %v84_v20 = vrot.slane %v1424_v12, 1  ;;  %v1447_v24 = vunpack.c.l.bf16 %v30_v18  ;;  %v1344_v31 = vld [vmem:[%s1743_s1 + $0x30] sm:$0xff]   ;;  %v1343_v36 = vld [vmem:[%s1743_s1 + $0x20] sm:$0xff]   ;;  %v38_v48 = vld [vmem:[%s1744_s0 + $0x38] sm:$0xff]  }
   0x6   :  { %v77_v15 = vrot.slane %v1413_v7, 1  ;;  %v78_v16 = vrot.slane %v1415_v8, 1  ;;  %v86_v25 = vrot.slane %v1429_v14, 1  ;;  %v1455_v30 = vunpack.c.h.bf16 %v30_v18  ;;  %v36_v40 = vld [vmem:[%s1744_s0 + $0x30] sm:$0xff]  }
   0x7   :  { %1217 = vmatpush3.bf16.msra.mxu0 %v1333_v2  ;;  %1237 = vmatpush3.bf16.msra.mxu1 %v1334_v3  ;;  %v83_v28 = vsel %vm76_vm1, %v80_v17, %v82_v19  ;;  %v85_v29 = vsel %vm76_vm1, %v82_v19, %v84_v20  ;;  %v88_v34 = vrot.slane %v1447_v24, 1  ;;  %v1463_v35 = vunpack.c.l.bf16 %v32_v21 }
   0x8   :  { %1254 = vmatprep.subr.bf16.mxu0 %v1337_v10  ;;  %v79_v22 = vsel %vm76_vm1, %v77_v15, %v78_v16  ;;  %v81_v23 = vsel %vm76_vm1, %v78_v16, %v80_v17  ;;  %1274 = vmatprep.subr.bf16.mxu1 %v1338_v13  ;;  %v127_v32 = vpack.c.bf16 %v85_v29, %v83_v28  ;;  %v90_v37 = vrot.slane %v1455_v30, 1 }
   0x9   :  { %v126_v27 = vpack.c.bf16 %v81_v23, %v79_v22  ;;  %v87_v33 = vsel %vm76_vm1, %v84_v20, %v86_v25  ;;  %v1470_v38 = vunpack.c.h.bf16 %v32_v21  ;;  %v1472_v39 = vunpack.c.l.bf16 %v34_v26 }
   0xa   :  { %1239 = vmatmul.mubr.msk.bf16.vlgmr.msra.gmra.mxu1 %vm151_vm0, %v26_v5  ;;  %v89_v41 = vsel %vm76_vm1, %v86_v25, %v88_v34  ;;  %v92_v42 = vrot.slane %v1463_v35, 1  ;;  %v1481_v43 = vunpack.c.h.bf16 %v34_v26  ;;  %v91_v45 = vsel %vm76_vm1, %v88_v34, %v90_v37 }
   0xb   :  { %1218 = vmatprep.mubr.msk.bf16.mxu0 %vm151_vm0, %v126_v27  ;;  %1275 = vmatpush3.bf16.msra.mxu1 %v1338_v13  ;;  %v128_v44 = vpack.c.bf16 %v89_v41, %v87_v33  ;;  %v94_v46 = vrot.slane %v1470_v38, 1  ;;  %v96_v47 = vrot.slane %v1472_v39, 1  ;;  %v1490_v50 = vunpack.c.l.bf16 %v36_v40 }
   0xc   :  { %1219 = vmatmul.mubr.msk.bf16.vlgmr.msra.gmra.mxu0 %vm151_vm0, %v127_v32  ;;  %1242 = vmatprep.mubr.msk.bf16.mxu1 %vm151_vm0, %v28_v6  ;;  %v93_v49 = vsel %vm76_vm1, %v90_v37, %v92_v42  ;;  %v1495_v53 = vunpack.c.h.bf16 %v36_v40  ;;  %v1497_v55 = vunpack.c.l.bf16 %v38_v48  ;;  %v98_v57 = vrot.slane %v1481_v43, 1 }
   0xd   :  { %1255 = vmatpush3.bf16.msra.mxu0 %v1337_v10  ;;  %1276 = vmatprep.subr.bf16.mxu1 %v1344_v31  ;;  %v95_v51 = vsel %vm76_vm1, %v92_v42, %v94_v46  ;;  %v97_v52 = vsel %vm76_vm1, %v94_v46, %v96_v47  ;;  %v129_v54 = vpack.c.bf16 %v93_v49, %v91_v45  ;;  %v100_v58 = vrot.slane %v1490_v50, 1 }
   0xe   :  { %1256 = vmatprep.subr.bf16.mxu0 %v1343_v36  ;;  %1222 = vmatprep.mubr.msk.bf16.mxu0 %vm151_vm0, %v128_v44  ;;  %v130_v56 = vpack.c.bf16 %v97_v52, %v95_v51  ;;  %v102_v59 = vrot.slane %v1495_v53, 1  ;;  %v104_v60 = vrot.slane %v1497_v55, 1  ;;  %v99_v61 = vsel %vm76_vm1, %v96_v47, %v98_v57 }
   0xf   :  { %1277 = vmatpush3.bf16.msra.mxu1 %v1344_v31  ;;  %v101_v62 = vsel %vm76_vm1, %v98_v57, %v100_v58  ;;  %v1509_v63 = vunpack.c.h.bf16 %v38_v48  ;;  %v659_v3 = vrot.slane %v1413_v7, 3  ;;  %v660_v4 = vrot.slane %v1415_v8, 3 }
  0x10   :  { %v103_v0 = vsel %vm76_vm1, %v100_v58, %v102_v59  ;;  %v105_v1 = vsel %vm76_vm1, %v102_v59, %v104_v60  ;;  %v131_v2 = vpack.c.bf16 %v101_v62, %v99_v61  ;;  %v662_v5 = vrot.slane %v1417_v9, 3 }
  0x11   :  { %1257 = vmatpush3.bf16.msra.mxu0 %v1343_v36  ;;  %v132_v6 = vpack.c.bf16 %v105_v1, %v103_v0  ;;  %v106_v10 = vrot.slane %v1509_v63, 1  ;;  %v447_v13 = vrot.slane %v1413_v7, 2  ;;  %v448_v16 = vrot.slane %v1415_v8, 2  ;;  %v981_v7 = vld [vmem:[%s1745_s4 + $0x70] sm:$0xff] }
  0x12   :  { %1243 = vmatmul.mubr.msk.bf16.gmra.mxu1 %vm151_vm0, %v30_v18  ;;  %v450_v17 = vrot.slane %v1417_v9, 2  ;;  %v661_v18 = vsel %vm658_vm2, %v659_v3, %v660_v4  ;;  %v663_v19 = vsel %vm658_vm2, %v660_v4, %v662_v5  ;;  %v666_v22 = vrot.slane %v1424_v12, 3 }
  0x13   :  { %1246 = vmatprep.mubr.msk.bf16.mxu1 %vm151_vm0, %v32_v21  ;;  %v107_v20 = vsel %vm76_vm1, %v104_v60, %v106_v10  ;;  %v125_v8 = vsel %vm76_vm1, %v106_v10, %v77_v15  ;;  %v449_v9 = vsel %vm446_vm3, %v447_v13, %v448_v16  ;;  %v664_v23 = vrot.slane %v1422_v11, 3 }
  0x14   :  { %1223 = vmatmul.mubr.msk.bf16.gmra.mxu0 %vm151_vm0, %v129_v54  ;;  %v451_v21 = vsel %vm446_vm3, %v448_v16, %v450_v17  ;;  %v708_v25 = vpack.c.bf16 %v663_v19, %v661_v18  ;;  %v668_v27 = vrot.slane %v1429_v14, 3  ;;  %v670_v28 = vrot.slane %v1447_v24, 3 }
  0x15   :  { %1226 = vmatprep.mubr.msk.bf16.mxu0 %vm151_vm0, %v130_v56  ;;  %v454_v29 = vrot.slane %v1424_v12, 2  ;;  %v452_v15 = vrot.slane %v1422_v11, 2  ;;  %v496_v31 = vpack.c.bf16 %v451_v21, %v449_v9  ;;  %v456_v32 = vrot.slane %v1429_v14, 2 }
  0x16   :  { %v458_v33 = vrot.slane %v1447_v24, 2  ;;  %v665_v34 = vsel %vm658_vm2, %v662_v5, %v664_v23  ;;  %v667_v36 = vsel %vm658_vm2, %v664_v23, %v666_v22  ;;  %v669_v37 = vsel %vm658_vm2, %v666_v22, %v668_v27 }
  0x17   :  { %v671_v12 = vsel %vm658_vm2, %v668_v27, %v670_v28  ;;  %v453_v11 = vsel %vm446_vm3, %v450_v17, %v452_v15  ;;  %v455_v14 = vsel %vm446_vm3, %v452_v15, %v454_v29  ;;  %v457_v24 = vsel %vm446_vm3, %v454_v29, %v456_v32 }
  0x18   :  { %v459_v41 = vsel %vm446_vm3, %v456_v32, %v458_v33  ;;  %v710_v42 = vpack.c.bf16 %v671_v12, %v669_v37  ;;  %v672_v44 = vrot.slane %v1455_v30, 3  ;;  %v674_v45 = vrot.slane %v1463_v35, 3  ;;  %v977_v37 = vld [vmem:[%s1745_s4 + $0x50] sm:$0xff]  ;;  %v976_v12 = vld [vmem:[%s1745_s4 + $0x48] sm:$0xff] }
  0x19   :  { %v497_v46 = vpack.c.bf16 %v455_v14, %v453_v11  ;;  %v676_v47 = vrot.slane %v1470_v38, 3  ;;  %v498_v49 = vpack.c.bf16 %v459_v41, %v457_v24  ;;  %v460_v51 = vrot.slane %v1455_v30, 2  ;;  %v975_v11 = vld [vmem:[%s1745_s4 + $0x40] sm:$0xff]  ;;  %v974_v14 = vld [vmem:[%s1745_s4 + $0x38] sm:$0xff]  ;;  %v972_v24 = vld [vmem:[%s1745_s4 + $0x28] sm:$0xff] }
  0x1a   :  { %1247 = vmatmul.mubr.msk.bf16.gmra.mxu1 %vm151_vm0, %v34_v26  ;;  %v133_v26 = vpack.c.bf16 %v125_v8, %v107_v20  ;;  %v462_v52 = vrot.slane %v1463_v35, 2  ;;  %v464_v54 = vrot.slane %v1470_v38, 2  ;;  %v466_v56 = vrot.slane %v1472_v39, 2  ;;  %v971_v41 = vld [vmem:[%s1745_s4 + $0x20] sm:$0xff] }
  0x1b   :  { %1250 = vmatprep.mubr.msk.bf16.mxu1 %vm151_vm0, %v36_v40  ;;  %v709_v40 = vpack.c.bf16 %v667_v36, %v665_v34  ;;  %v673_v57 = vsel %vm658_vm2, %v670_v28, %v672_v44  ;;  %v675_v58 = vsel %vm658_vm2, %v672_v44, %v674_v45  ;;  %v677_v59 = vsel %vm658_vm2, %v674_v45, %v676_v47  ;;  %v979_v34 = vld [vmem:[%s1745_s4 + $0x60] sm:$0xff]  ;;  %v978_v36 = vld [vmem:[%s1745_s4 + $0x58] sm:$0xff]  ;;  %v969_v44 = vld [vmem:[%s1745_s4 + $0x10] sm:$0xff] }
  0x1c   :  { %1227 = vmatmul.mubr.msk.bf16.gmra.mxu0 %vm151_vm0, %v131_v2  ;;  %v461_v35 = vsel %vm446_vm3, %v458_v33, %v460_v51  ;;  %v463_v38 = vsel %vm446_vm3, %v460_v51, %v462_v52  ;;  %v711_v60 = vpack.c.bf16 %v675_v58, %v673_v57  ;;  %v467_v61 = vsel %vm446_vm3, %v464_v54, %v466_v56  ;;  %v968_v45 = vld [vmem:[%s1745_s4 + $0x8] sm:$0xff] }
  0x1d   :  { %1230 = vmatprep.mubr.msk.bf16.mxu0 %vm151_vm0, %v132_v6  ;;  %v680_v0 = vrot.slane %v1481_v43, 3  ;;  %v682_v1 = vrot.slane %v1490_v50, 3  ;;  %v499_v2 = vpack.c.bf16 %v463_v38, %v461_v35  ;;  %v684_v4 = vrot.slane %v1495_v53, 3 }
  0x1e   :  { %v686_v5 = vrot.slane %v1497_v55, 3  ;;  %v468_v10 = vrot.slane %v1481_v43, 2  ;;  %v470_v16 = vrot.slane %v1490_v50, 2  ;;  %v472_v17 = vrot.slane %v1495_v53, 2 }
  0x1f   :  { %v474_v18 = vrot.slane %v1497_v55, 2  ;;  %v683_v20 = vsel %vm658_vm2, %v680_v0, %v682_v1  ;;  %v685_v8 = vsel %vm658_vm2, %v682_v1, %v684_v4  ;;  %v688_v23 = vrot.slane %v1509_v63, 3 }
  0x20   :  { %v687_v43 = vsel %vm658_vm2, %v684_v4, %v686_v5  ;;  %v469_v50 = vsel %vm446_vm3, %v466_v56, %v468_v10  ;;  %v471_v53 = vsel %vm446_vm3, %v468_v10, %v470_v16  ;;  %v473_v55 = vsel %vm446_vm3, %v470_v16, %v472_v17 }
  0x21   :  { %v475_v21 = vsel %vm446_vm3, %v472_v17, %v474_v18  ;;  %v714_v22 = vpack.c.bf16 %v687_v43, %v685_v8  ;;  %v476_v27 = vrot.slane %v1509_v63, 2  ;;  %v689_v28 = vsel %vm658_vm2, %v686_v5, %v688_v23 }
  0x22   :  { %1251 = vmatmul.mubr.msk.bf16.gmra.mxu1 %vm151_vm0, %v38_v48  ;;  %v678_v48 = vrot.slane %v1472_v39, 3  ;;  %v465_v39 = vsel %vm446_vm3, %v462_v52, %v464_v54  ;;  %v707_v29 = vsel %vm658_vm2, %v688_v23, %v659_v3  ;;  %v1355_v33 = vmov 0.0   ;;  %v982_v3 = vld [vmem:[%s1745_s4 + $0x78] sm:$0xff] }
  0x23   :  { %1278 = vmatprep.mubr.msk.bf16.mxu1 %vm151_vm0, %v708_v25  ;;  %v500_v6 = vpack.c.bf16 %v467_v61, %v465_v39  ;;  %v501_v25 = vpack.c.bf16 %v471_v53, %v469_v50  ;;  %v477_v15 = vsel %vm446_vm3, %v474_v18, %v476_v27  ;;  %v495_v63 = vsel %vm446_vm3, %v476_v27, %v447_v13  ;;  %v980_v13 = vld [vmem:[%s1745_s4 + $0x68] sm:$0xff] }
  0x24   :  { %1231 = vmatmul.mubr.msk.bf16.gmra.mxu0 %vm151_vm0, %v133_v26  ;;  %v679_v30 = vsel %vm658_vm2, %v676_v47, %v678_v48  ;;  %v681_v19 = vsel %vm658_vm2, %v678_v48, %v680_v0  ;;  %v502_v26 = vpack.c.bf16 %v475_v21, %v473_v55  ;;  %v503_v32 = vpack.c.bf16 %v495_v63, %v477_v15 }
  0x25   :  { %1258 = vmatprep.mubr.msk.bf16.mxu0 %vm151_vm0, %v496_v31  ;;  %v712_v62 = vpack.c.bf16 %v679_v30, %v677_v59  ;;  %v713_v9 = vpack.c.bf16 %v683_v20, %v681_v19  ;;  %v715_v31 = vpack.c.bf16 %v707_v29, %v689_v28  ;;  %1294 = vmatprep.subr.mxu0 %v1355_v33 }
  0x2a   :  { %1279 = vmatmul.mubr.msk.bf16.vlgmr.msra.gmra.mxu1 %vm151_vm0, %v709_v40  ;;  %v973_v40 = vld [vmem:[%s1745_s4 + $0x30] sm:$0xff] }
  0x2b   :  { %1282 = vmatprep.mubr.msk.bf16.mxu1 %vm151_vm0, %v710_v42  ;;  %v970_v42 = vld [vmem:[%s1745_s4 + $0x18] sm:$0xff] }
  0x2c   :  { %1259 = vmatmul.mubr.msk.bf16.vlgmr.msra.gmra.mxu0 %vm151_vm0, %v497_v46  ;;  %v967_v46 = vld [vmem:[%s1745_s4] sm:$0xff] }
  0x2d   :  { %1262 = vmatprep.mubr.msk.bf16.mxu0 %vm151_vm0, %v498_v49  ;;  %1295 = vmatpush3.msra.mxu0 %v982_v3  ;;  %v1700_v3 = vld [vmem:[%s1746_s3 + $0x8] sm:$0xff] }
  0x2e   :  { %1296 = vmatprep.subr.mxu0 %v1355_v33 }
  0x2f   :  { %1297 = vmatpush3.msra.mxu0 %v981_v7 }
  0x30   :  { %1298 = vmatprep.subr.mxu0 %v1355_v33 }
  0x31   :  { %1299 = vmatpush3.msra.mxu0 %v980_v13 }
  0x32   :  { %1283 = vmatmul.mubr.msk.bf16.gmra.mxu1 %vm151_vm0, %v711_v60  ;;  %1300 = vmatprep.subr.mxu0 %v1355_v33 }
  0x33   :  { %1286 = vmatprep.mubr.msk.bf16.mxu1 %vm151_vm0, %v712_v62  ;;  %1301 = vmatpush3.msra.mxu0 %v979_v34 }
  0x34   :  { %1263 = vmatmul.mubr.msk.bf16.gmra.mxu0 %vm151_vm0, %v499_v2  ;;  %1302 = vmatprep.subr.mxu0 %v1355_v33 }
  0x35   :  { %1266 = vmatprep.mubr.msk.bf16.mxu0 %vm151_vm0, %v500_v6  ;;  %1303 = vmatpush3.msra.mxu0 %v978_v36 }
  0x36   :  { %1304 = vmatprep.subr.mxu0 %v1355_v33 }
  0x37   :  { %1305 = vmatpush3.msra.mxu0 %v977_v37 }
  0x38   :  { %1306 = vmatprep.subr.mxu0 %v1355_v33 }
  0x39   :  { %1307 = vmatpush3.msra.mxu0 %v976_v12 }
  0x3a   :  { %1287 = vmatmul.mubr.msk.bf16.gmra.mxu1 %vm151_vm0, %v713_v9  ;;  %1308 = vmatprep.subr.mxu0 %v1355_v33 }
  0x3b   :  { %1290 = vmatprep.mubr.msk.bf16.mxu1 %vm151_vm0, %v714_v22  ;;  %1309 = vmatpush3.msra.mxu0 %v975_v11 }
  0x3c   :  { %1267 = vmatmul.mubr.msk.bf16.gmra.mxu0 %vm151_vm0, %v501_v25  ;;  %1310 = vmatprep.subr.mxu0 %v1355_v33 }
  0x3d   :  { %1270 = vmatprep.mubr.msk.bf16.mxu0 %vm151_vm0, %v502_v26  ;;  %1311 = vmatpush3.msra.mxu0 %v974_v14 }
  0x3e   :  { %1312 = vmatprep.subr.mxu0 %v1355_v33 }
  0x3f   :  { %1313 = vmatpush3.msra.mxu0 %v973_v40 }
  0x40   :  { %1314 = vmatprep.subr.mxu0 %v1355_v33 }
  0x41   :  { %1315 = vmatpush3.msra.mxu0 %v972_v24 }
  0x42   :  { %1291 = vmatmul.mubr.msk.bf16.gmra.mxu1 %vm151_vm0, %v715_v31  ;;  %1316 = vmatprep.subr.mxu0 %v1355_v33 }
  0x43   :  { %1317 = vmatpush3.msra.mxu0 %v971_v41 }
  0x44   :  { %1271 = vmatmul.mubr.msk.bf16.gmra.mxu0 %vm151_vm0, %v503_v32  ;;  %1318 = vmatprep.subr.mxu0 %v1355_v33 }
  0x45   :  { %1326 = vmatprep.mubr.msk.f32.mxu0 %vm1356_vm4, %v1355_v33  ;;  %1319 = vmatpush3.msra.mxu0 %v970_v42 }
  0x46   :  { %1320 = vmatprep.subr.mxu0 %v1355_v33 }
  0x47   :  { %1321 = vmatpush3.msra.mxu0 %v969_v44 }
  0x48   :  { %1322 = vmatprep.subr.mxu0 %v1355_v33 }
  0x49   :  { %1323 = vmatpush3.msra.mxu0 %v968_v45 }
  0x4a   :  { %1324 = vmatprep.subr.mxu0 %v1355_v33  ;;  %v1695_v33 = vld [vmem:[%s1746_s3] sm:$0xff] }
  0x4b   :  { %1325 = vmatpush3.msra.mxu0 %v967_v46 }
  0xca   :  { %v1240_v47 = vpop.f32.mrf.mxu1 }
  0xcc   :  { %v1220_v48 = vpop.f32.mrf.mxu0  ;;  %v383_v49 = vpop.f32.mrf.mxu1 }
  0xcd   :  { %v392_v9 = vadd.f32 %v1240_v47, %v1220_v48 }
  0xce   :  { %v210_v51 = vpop.f32.mrf.mxu0  ;;  %v1241_v52 = vpop.f32.mrf.mxu1 }
  0xcf   :  { %v384_v22 = vadd.f32 %v383_v49, %v210_v51 }
  0xd0   :  { %v1221_v54 = vpop.f32.mrf.mxu0  ;;  %v386_v56 = vpop.f32.mrf.mxu1 }
  0xd1   :  { %v395_v27 = vadd.f32 %v1241_v52, %v1221_v54 }
  0xd2   :  { %v213_v57 = vpop.f32.mrf.mxu0  ;;  %v1244_v58 = vpop.f32.mrf.mxu1 }
  0xd3   :  { %v387_v63 = vadd.f32 %v386_v56, %v213_v57 }
  0xd4   :  { %v1224_v59 = vpop.f32.mrf.mxu0  ;;  %v399_v30 = vpop.f32.mrf.mxu1 }
  0xd5   :  { %v408_v12 = vadd.f32 %v1244_v58, %v1224_v59 }
  0xd6   :  { %v226_v35 = vpop.f32.mrf.mxu0  ;;  %v1245_v38 = vpop.f32.mrf.mxu1 }
  0xd7   :  { %v400_v40 = vadd.f32 %v399_v30, %v226_v35 }
  0xd8   :  { %v1225_v60 = vpop.f32.mrf.mxu0  ;;  %v402_v39 = vpop.f32.mrf.mxu1 }
  0xd9   :  { %v411_v52 = vadd.f32 %v1245_v38, %v1225_v60 }
  0xda   :  { %v229_v61 = vpop.f32.mrf.mxu0  ;;  %v1660_v62 = vpop.f32.mrf.mxu1 }
  0xdb   :  { %v403_v57 = vadd.f32 %v402_v39, %v229_v61 }
  0xdc   :  { %v1662_v0 = vpop.f32.mrf.mxu0  ;;  %v1664_v1 = vpop.f32.mrf.mxu1 }
  0xde   :  { %v1666_v2 = vpop.f32.mrf.mxu0  ;;  %v1668_v4 = vpop.f32.mrf.mxu1 }
  0xdf   :  { %v416_v60 = vadd.f32 %v1664_v1, %v1666_v2 }
  0xe0   :  { %v1670_v5 = vpop.f32.mrf.mxu0  ;;  %v1672_v6 = vpop.f32.mrf.mxu1 }
  0xe2   :  { %v1674_v10 = vpop.f32.mrf.mxu0  ;;  %v1676_v16 = vpop.f32.mrf.mxu1 }
  0xe3   :  { %v419_v1 = vadd.f32 %v1672_v6, %v1674_v10 }
  0xe4   :  { %v1678_v17 = vpop.f32.mrf.mxu0  ;;  %v1680_v18 = vpop.f32.mrf.mxu1 }
  0xe6   :  { %v1682_v19 = vpop.f32.mrf.mxu0  ;;  %v1684_v20 = vpop.f32.mrf.mxu1 }
  0xe8   :  { %v1686_v8 = vpop.f32.mrf.mxu0  ;;  %v1688_v43 = vpop.f32.mrf.mxu1 }
  0xea   :  { %v1690_v50 = vpop.f32.mrf.mxu0  ;;  %v1280_v53 = vpop.f32.mrf.mxu1 }
  0xec   :  { %v1260_v55 = vpop.f32.mrf.mxu0  ;;  %v791_v21 = vpop.f32.mrf.mxu1 }
  0xed   :  { %v644_v23 = vadd.f32 %v1260_v55, %v392_v9 }
  0xee   :  { %v579_v25 = vpop.f32.mrf.mxu0  ;;  %v1281_v26 = vpop.f32.mrf.mxu1 }
  0xef   :  { %v642_v28 = vadd.f32 %v579_v25, %v384_v22  ;;  %v856_v31 = vadd.f32 %v1280_v53, %v644_v23  ;;  %v424_v22 = vadd.f32 %v1660_v62, %v1662_v0  ;;  %v427_v0 = vadd.f32 %v1668_v4, %v1670_v5 }
  0xf0   :  { %v1261_v29 = vpop.f32.mrf.mxu0  ;;  %v794_v15 = vpop.f32.mrf.mxu1  ;;  %v440_v4 = vadd.f32 %v1676_v16, %v1678_v17 }
  0xf1   :  { %v645_v32 = vadd.f32 %v1261_v29, %v395_v27  ;;  %v854_v34 = vadd.f32 %v791_v21, %v642_v28  ;;  %v874_v24 = vadd.f32 %v1695_v33, %v856_v31 }
  0xf2   :  { %v582_v7 = vpop.f32.mrf.mxu0  ;;  %v1284_v13 = vpop.f32.mrf.mxu1 }
  0xf3   :  { %v857_v36 = vadd.f32 %v1281_v26, %v645_v32  ;;  %v643_v37 = vadd.f32 %v582_v7, %v387_v63  ;;  %v872_v47 = vadd.f32 %v1695_v33, %v854_v34 }
  0xf4   :  { %v1264_v11 = vpop.f32.mrf.mxu0  ;;  %v807_v14 = vpop.f32.mrf.mxu1 }
  0xf5   :  { %v875_v41 = vadd.f32 %v1700_v3, %v857_v36  ;;  %v855_v42 = vadd.f32 %v794_v15, %v643_v37  ;;  %v648_v44 = vadd.f32 %v1264_v11, %v408_v12 }
  0xf6   :  { %v595_v45 = vpop.f32.mrf.mxu0  ;;  %v1285_v46 = vpop.f32.mrf.mxu1 }
  0xf7   :  { %v895_v48 = vmax.f32 %v874_v24, %v875_v41  ;;  %v873_v49 = vadd.f32 %v1700_v3, %v855_v42  ;;  %v646_v51 = vadd.f32 %v595_v45, %v400_v40  ;;  %v860_v30 = vadd.f32 %v1284_v13, %v648_v44 }
  0xf8   :  { %v1265_v54 = vpop.f32.mrf.mxu0  ;;  %v810_v56 = vpop.f32.mrf.mxu1 }
  0xf9   :  { %v896_v58 = vrot.slane %v895_v48, 4  ;;  %v888_v59 = vmax.f32 %v872_v47, %v873_v49  ;;  %v649_v35 = vadd.f32 %v1265_v54, %v411_v52  ;;  %v858_v55 = vadd.f32 %v807_v14, %v646_v51 }
  0xfa   :  { %v598_v53 = vpop.f32.mrf.mxu0  ;;  %v1288_v9 = vpop.f32.mrf.mxu1  ;;  %v878_v39 = vadd.f32 %v1695_v33, %v860_v30  ;;  %v432_v51 = vadd.f32 %v1680_v18, %v1682_v19  ;;  %v443_v30 = vadd.f32 %v1684_v20, %v1686_v8 }
  0xfb   :  { %v647_v21 = vadd.f32 %v598_v53, %v403_v57  ;;  %v861_v23 = vadd.f32 %v1285_v46, %v649_v35  ;;  %v897_v27 = vmax.f32 %v895_v48, %v896_v58  ;;  %v889_v28 = vrot.slane %v888_v59, 4 }
  0xfc   :  { %v1268_v25 = vpop.f32.mrf.mxu0  ;;  %v823_v26 = vpop.f32.mrf.mxu1  ;;  %v876_v31 = vadd.f32 %v1695_v33, %v858_v55 }
  0xfd   :  { %v859_v38 = vadd.f32 %v810_v56, %v647_v21  ;;  %v879_v61 = vadd.f32 %v1700_v3, %v861_v23  ;;  %v652_v29 = vadd.f32 %v1268_v25, %v424_v22  ;;  %v898_v2 = vrot.slane %v897_v27, 2 }
  0xfe   :  { %v611_v15 = vpop.f32.mrf.mxu0  ;;  %v1289_v63 = vpop.f32.mrf.mxu1  ;;  %v890_v36 = vmax.f32 %v888_v59, %v889_v28  ;;  %v435_v23 = vadd.f32 %v1688_v43, %v1690_v50 }
  0xff   :  { %v877_v62 = vadd.f32 %v1700_v3, %v859_v38  ;;  %v909_v32 = vmax.f32 %v878_v39, %v879_v61  ;;  %v650_v7 = vadd.f32 %v611_v15, %v416_v60  ;;  %v864_v11 = vadd.f32 %v1288_v9, %v652_v29 }
 0x100   :  { %v1269_v13 = vpop.f32.mrf.mxu0  ;;  %v826_v34 = vpop.f32.mrf.mxu1  ;;  %v899_v47 = vmax.f32 %v897_v27, %v898_v2  ;;  %v891_v48 = vrot.slane %v890_v36, 2 }
 0x101   :  { %v902_v37 = vmax.f32 %v876_v31, %v877_v62  ;;  %v910_v12 = vrot.slane %v909_v32, 4  ;;  %v653_v14 = vadd.f32 %v1269_v13, %v427_v0  ;;  %v862_v42 = vadd.f32 %v823_v26, %v650_v7  ;;  %v1155_v0 = vld [vmem:[%s1747_s2] ss:$0 sm:$0xff] }
 0x102   :  { %v614_v40 = vpop.f32.mrf.mxu0  ;;  %v1292_v24 = vpop.f32.mrf.mxu1  ;;  %v882_v54 = vadd.f32 %v1695_v33, %v864_v11  ;;  %v900_v55 = vrot.slane %v899_v47, 1  ;;  %v892_v18 = vmax.f32 %v890_v36, %v891_v48 }
 0x103   :  { %v903_v41 = vrot.slane %v902_v37, 4  ;;  %v651_v44 = vadd.f32 %v614_v40, %v419_v1  ;;  %v911_v5 = vmax.f32 %v909_v32, %v910_v12  ;;  %v865_v45 = vadd.f32 %v1289_v63, %v653_v14 }
 0x104   :  { %v1272_v46 = vpop.f32.mrf.mxu0  ;;  %v839_v49 = vpop.f32.mrf.mxu1  ;;  %v880_v16 = vadd.f32 %v1695_v33, %v862_v42  ;;  %v901_v29 = vmax.f32 %v899_v47, %v900_v55  ;;  %v893_v15 = vrot.slane %v892_v18, 1 }
 0x105   :  { %v904_v6 = vmax.f32 %v902_v37, %v903_v41  ;;  %v863_v10 = vadd.f32 %v826_v34, %v651_v44  ;;  %v912_v52 = vrot.slane %v911_v5, 2  ;;  %v883_v56 = vadd.f32 %v1700_v3, %v865_v45 }
 0x106   :  { %v627_v57 = vpop.f32.mrf.mxu0  ;;  %v656_v59 = vadd.f32 %v1272_v46, %v440_v4  ;;  %v1293_v22 = vpop.f32.mrf.mxu1  ;;  %v952_v12 = vadd.f32 %v1155_v0, %v901_v29  ;;  %v894_v11 = vmax.f32 %v892_v18, %v893_v15 }
 0x107   :  { %v905_v58 = vrot.slane %v904_v6, 2  ;;  %v881_v17 = vadd.f32 %v1700_v3, %v863_v10  ;;  %v923_v35 = vmax.f32 %v882_v54, %v883_v56  ;;  %v654_v53 = vadd.f32 %v627_v57, %v432_v51 }
 0x108   :  { %v1273_v9 = vpop.f32.mrf.mxu0  ;;  %v913_v25 = vmax.f32 %v911_v5, %v912_v52  ;;  %v868_v60 = vadd.f32 %v1292_v24, %v656_v59  ;;  %v842_v62 = vpop.f32.mrf.mxu1  ;;  %v960_v46 = vmax.f32 %v952_v12, 0.0  ;;  %v951_v47 = vadd.f32 %v1155_v0, %v894_v11 }
 0x109   :  { %v906_v19 = vmax.f32 %v904_v6, %v905_v58  ;;  %v916_v21 = vmax.f32 %v880_v16, %v881_v17  ;;  %v924_v26 = vrot.slane %v923_v35, 4  ;;  %v657_v39 = vadd.f32 %v1273_v9, %v443_v30 }
 0x10a   :  { %v630_v27 = vpop.f32.mrf.mxu0  ;;  %v866_v20 = vadd.f32 %v839_v49, %v654_v53  ;;  %v914_v7 = vrot.slane %v913_v25, 1  ;;  %v886_v34 = vadd.f32 %v1695_v33, %v868_v60  ;;  %v998_v56 = vrot.slane %v960_v46, 7 }
 0x10b   :  { %v907_v28 = vrot.slane %v906_v19, 1  ;;  %v917_v38 = vrot.slane %v916_v21, 4  ;;  %v925_v61 = vmax.f32 %v923_v35, %v924_v26  ;;  %v655_v8 = vadd.f32 %v630_v27, %v435_v23 }
 0x10c   :  { %v869_v31 = vadd.f32 %v1293_v22, %v657_v39  ;;  %v884_v36 = vadd.f32 %v1695_v33, %v866_v20  ;;  %v915_v42 = vmax.f32 %v913_v25, %v914_v7  ;;  %v959_v57 = vmax.f32 %v951_v47, 0.0 }
 0x10d   :  { %v918_v63 = vmax.f32 %v916_v21, %v917_v38  ;;  %v908_v43 = vmax.f32 %v906_v19, %v907_v28  ;;  %v926_v50 = vrot.slane %v925_v61, 2  ;;  %v867_v32 = vadd.f32 %v842_v62, %v655_v8 }
 0x10e   :  { %v887_v1 = vadd.f32 %v1700_v3, %v869_v31  ;;  %v954_v33 = vadd.f32 %v1155_v0, %v915_v42  ;;  %v1000_v55 = vsel %vm999_vm5, %v998_v56, %v959_v57  ;;  %v1156_v31 = vld [vmem:[%s1748_s5] ss:$0 sm:$0xff] }
 0x10f   :  { %v919_v13 = vrot.slane %v918_v63, 2  ;;  %v927_v2 = vmax.f32 %v925_v61, %v926_v50  ;;  %v885_v37 = vadd.f32 %v1700_v3, %v867_v32  ;;  %v953_v24 = vadd.f32 %v1155_v0, %v908_v43 }
 0x110   :  { %v937_v40 = vmax.f32 %v886_v34, %v887_v1  ;;  %v962_v30 = vmax.f32 %v954_v33, 0.0 }
 0x111   :  { %v920_v14 = vmax.f32 %v918_v63, %v919_v13  ;;  %v930_v41 = vmax.f32 %v884_v36, %v885_v37  ;;  %v928_v44 = vrot.slane %v927_v2, 1  ;;  %v961_v10 = vmax.f32 %v953_v24, 0.0 }
 0x112   :  { %v938_v5 = vrot.slane %v937_v40, 4  ;;  %v1004_v23 = vrot.slane %v962_v30, 5 }
 0x113   :  { %v921_v4 = vrot.slane %v920_v14, 1  ;;  %v931_v45 = vrot.slane %v930_v41, 4  ;;  %v929_v51 = vmax.f32 %v927_v2, %v928_v44  ;;  %v1001_v16 = vrot.slane %v961_v10, 6 }
 0x114   :  { %v939_v6 = vmax.f32 %v937_v40, %v938_v5 }
 0x115   :  { %v922_v48 = vmax.f32 %v920_v14, %v921_v4  ;;  %v932_v49 = vmax.f32 %v930_v41, %v931_v45  ;;  %v956_v35 = vadd.f32 %v1155_v0, %v929_v51  ;;  %v1003_v22 = vsel %vm1002_vm6, %v1001_v16, %v1000_v55 }
 0x116   :  { %v940_v52 = vrot.slane %v939_v6, 2  ;;  %v1006_v38 = vsel %vm1005_vm7, %v1004_v23, %v1003_v22 }
 0x117   :  { %v955_v3 = vadd.f32 %v1155_v0, %v922_v48  ;;  %v933_v54 = vrot.slane %v932_v49, 2  ;;  %v964_v25 = vmax.f32 %v956_v35, 0.0 }
 0x118   :  { %v941_v58 = vmax.f32 %v939_v6, %v940_v52 }
 0x119   :  { %v963_v17 = vmax.f32 %v955_v3, 0.0  ;;  %v934_v59 = vmax.f32 %v932_v49, %v933_v54  ;;  %v1010_v61 = vrot.slane %v964_v25, 3 }
 0x11a   :  { %v942_v53 = vrot.slane %v941_v58, 1 }
 0x11b   :  { %v935_v9 = vrot.slane %v934_v59, 1  ;;  %v1007_v19 = vrot.slane %v963_v17, 4 }
 0x11c   :  { %v943_v18 = vmax.f32 %v941_v58, %v942_v53 }
 0x11d   :  { %v936_v21 = vmax.f32 %v934_v59, %v935_v9  ;;  %v1009_v39 = vsel %vm1008_vm8, %v1007_v19, %v1006_v38 }
 0x11e   :  { %v958_v26 = vadd.f32 %v1155_v0, %v943_v18  ;;  %v1012_v8 = vsel %vm1011_vm9, %v1010_v61, %v1009_v39 }
 0x11f   :  { %v957_v27 = vadd.f32 %v1155_v0, %v936_v21 }
 0x120   :  { %v966_v28 = vmax.f32 %v958_v26, 0.0 }
 0x121   :  { %v965_v60 = vmax.f32 %v957_v27, 0.0 }
 0x122   :  { %v1016_v29 = vrot.slane %v966_v28, 1 }
 0x123   :  { %v1013_v20 = vrot.slane %v965_v60, 2 }
 0x125   :  { %v1015_v15 = vsel %vm1014_vm10, %v1013_v20, %v1012_v8 }
 0x126   :  { %v1018_v63 = vsel %vm1017_vm11, %v1016_v29, %v1015_v15 }
 0x127   :  { %1327 = vmatmul.mubr.f32.vlgmr.msra.gmra.mxu0 %v1018_v63 }
 0x1e7   :  { %v1086_v62 = vpop.f32.mrf.mxu0 }
 0x1e8   :  { %v1087_v0 = vadd.f32 %v1156_v31, %v1086_v62 }
 0x1e9   :  { %v1328_v43 = vpop.f32.mrf.mxu0 }
 0x1ea   :  { %1090 = vst [vmem:[%s1749_s6] sm:$0xff] %v1087_v0 }

</bundles_post_ra>
